<compile_context>
chip_gen: v6e
topology: v6e:2x2x1
jax: 0.10.0
libtpu: 0.0.40
codegen_flags: <defaults>
</compile_context>

<pallas_src>
import jax
import jax.numpy as jnp
import numpy as np
from jax.experimental import pallas as pl
from jax.experimental.pallas import tpu as pltpu

G = 4             # logical rows packed per lane-row (4*H = 128 lanes when H = 32)
_MASK_FEATS = 10  # torch: mask_p = (sum(x[..., :10] != 0) == 0)


def _erf_f32(x):
    # Abramowitz & Stegun 7.1.26 rational approximation (max abs err ~1.5e-7),
    # i.e. f32-accurate.  Avoids relying on a lax.erf lowering inside Mosaic.
    a1 = 0.254829592
    a2 = -0.284496736
    a3 = 1.421413741
    a4 = -1.453152027
    a5 = 1.061405429
    p = 0.3275911
    s = jnp.where(x >= 0.0, 1.0, -1.0)
    z = jnp.abs(x)
    # TODO(synk): pl.reciprocal(1.0 + p*z, approx=True) would move this divide
    # onto the EUP slot; skipped because approx-rcp error risks the 1e-4 GELU
    # tolerance and VALU has slack here anyway.
    t = 1.0 / (1.0 + p * z)
    poly = ((((a5 * t + a4) * t + a3) * t + a2) * t + a1) * t
    return s * (1.0 - poly * jnp.exp(-z * z))


def _gelu_exact(x):
    # Matches torch.nn.GELU() (erf-based, approximate='none').
    return 0.5 * x * (1.0 + _erf_f32(x * 0.7071067811865476))


def encoder_kernel(x_ref, w1_ref, b1_ref, w2_ref, b2_ref, seg_ref, out_ref):
    """Each kernel row is a group of G logical agent rows packed along lanes.

    x_ref   : (tm_g, G*D)  packed inputs
    w*_ref  : block-diagonal weights (G independent copies of the Mlp weights)
    seg_ref : (G*D, G*H) 0/1 segment-sum matrix; (x != 0) @ seg puts, on every
              output lane, the nonzero count of the first `_MASK_FEATS`
              features of the logical row that owns that lane.
    out_ref : (tm_g, G*H)  packed outputs
    """
    x = x_ref[...].astype(jnp.float32)
    # --- Mlp: fc1 -> GELU -> fc2 (dropout is identity at inference) ---
    h = jnp.dot(x, w1_ref[...], preferred_element_type=jnp.float32) + b1_ref[...]
    h = _gelu_exact(h)
    o = jnp.dot(h, w2_ref[...], preferred_element_type=jnp.float32) + b2_ref[...]
    # --- per-logical-row validity count (exact small integers via MXU) ---
    nz = jnp.dot((x != 0.0).astype(jnp.float32), seg_ref[...],
                 preferred_element_type=jnp.float32)
    out_ref[...] = jnp.where(nz < 0.5, 0.0, o).astype(out_ref.dtype)


def static_fusion_encoder(x, w1, b1, w2, b2, *, tm_rows=8192):
    """StaticFusionEncoder.forward (eval mode).

    x : (B, P, D) float32; w1: (D, H); b1: (H,); w2: (H, H); b2: (H,)
    (weights are stored (in, out), i.e. already transposed vs. torch Linear).
    Returns (x_result (B,P,H) f32, mask_p (B,P) bool, pos (B,P,7) f32).

    tm_rows: logical rows per grid step (G=4 of them are packed per lane-row).
    Sweep 4096-16384; the default 8192 keeps the per-tile VMEM footprint well
    inside the explicit 32 MiB scoped limit on v5e / v6e / v7x.
    """
    B, P, D = x.shape
    H = w1.shape[1]
    N = B * P

    # ---- pack G logical rows per lane-row --------------------------------
    # Pad the row count so the packed row count Ng is a multiple of 8
    # (sublane tiling).  Padded rows are all-zero -> masked to zero -> sliced.
    row_align = G * 8
    Npad = ((N + row_align - 1) // row_align) * row_align
    xf = x.reshape(N, D)
    if Npad != N:
        xf = jnp.pad(xf, ((0, Npad - N), (0, 0)))
    Ng = Npad // G
    xg = xf.reshape(Ng, G * D)

    # Block-diagonal weights: G independent copies of the Mlp act on the G
    # packed rows in one lane-dense matmul.  kron(eye, w) == blockdiag(w x G).
    eye = jnp.eye(G, dtype=jnp.float32)
    w1p = jnp.kron(eye, w1.astype(jnp.float32))                  # (G*D, G*H)
    w2p = jnp.kron(eye, w2.astype(jnp.float32))                  # (G*H, G*H)
    b1p = jnp.tile(b1.astype(jnp.float32), G).reshape(1, G * H)
    b2p = jnp.tile(b2.astype(jnp.float32), G).reshape(1, G * H)

    # Static 0/1 segment-sum matrix for the per-logical-row validity count.
    nmask = min(_MASK_FEATS, D)
    di = np.arange(G * D)
    hi = np.arange(G * H)
    seg_np = ((di[:, None] // D) == (hi[None, :] // H)) & ((di[:, None] % D) < nmask)
    segmat = jnp.asarray(seg_np, dtype=jnp.float32)              # (G*D, G*H)

    # ---- tile / grid selection -------------------------------------------
    tm_g = max(8, (int(tm_rows) // G // 8) * 8)
    if tm_g >= Ng:
        tm_g = Ng                                  # single block = whole array
    else:
        # Keep >= 2 roughly balanced blocks so v7x's two TensorCores both work.
        half = ((Ng // 2 + 7) // 8) * 8
        tm_g = min(tm_g, half)
    grid = pl.cdiv(Ng, tm_g)

    out = pl.pallas_call(
        encoder_kernel,
        out_shape=jax.ShapeDtypeStruct((Ng, G * H), jnp.float32),
        grid_spec=pltpu.PrefetchScalarGridSpec(
            num_scalar_prefetch=0,
            grid=(grid,),
            in_specs=[
                pl.BlockSpec((tm_g, G * D), lambda i: (i, 0)),    # packed rows
                pl.BlockSpec((G * D, G * H), lambda i: (0, 0)),   # fc1 weight (constant)
                pl.BlockSpec((1, G * H), lambda i: (0, 0)),       # fc1 bias   (constant)
                pl.BlockSpec((G * H, G * H), lambda i: (0, 0)),   # fc2 weight (constant)
                pl.BlockSpec((1, G * H), lambda i: (0, 0)),       # fc2 bias   (constant)
                pl.BlockSpec((G * D, G * H), lambda i: (0, 0)),   # mask segment matrix
            ],
            out_specs=pl.BlockSpec((tm_g, G * H), lambda i: (i, 0)),
        ),
        compiler_params=pltpu.CompilerParams(
            dimension_semantics=("parallel",),
            vmem_limit_bytes=32 * 1024 * 1024,
        ),
    )(xg, w1p, b1p, w2p, b2p, segmat)

    x_result = out.reshape(Npad, H)[:N].reshape(B, P, H)

    # mask_p + pos: trivial slices / compares on x that XLA fuses; kept out of
    # the kernel so its single output stream stays 128-lane dense.
    # TODO(synk): if profiles show the second x read matters once HBM-bound,
    # emit a lane-dense packed mask bitmap from the kernel instead.
    mask_p = jnp.all(x[..., :_MASK_FEATS] == 0.0, axis=-1)
    pos = x[:, :, :7]
    pos = pos.at[..., -3:].set(0.0)
    pos = pos.at[..., -2].set(1.0)

    return x_result, mask_p, pos


def _reference(x, w1, b1, w2, b2):
    """Pure-JAX reference matching the PyTorch module (eval mode)."""
    B, P, D = x.shape
    xf = x.reshape(-1, D)
    h = xf @ w1 + b1
    h = 0.5 * h * (1.0 + jax.lax.erf(h * 0.7071067811865476))
    o = h @ w2 + b2
    mask = jnp.all(xf[:, :_MASK_FEATS] == 0.0, axis=-1)
    o = jnp.where(mask[:, None], 0.0, o)
    pos = x[:, :, :7]
    pos = pos.at[..., -3:].set(0.0)
    pos = pos.at[..., -2].set(1.0)
    return o.reshape(B, P, -1), mask.reshape(B, P), pos


if __name__ == "__main__":
    key = jax.random.PRNGKey(0)
    k_x1, k_p1, k_x2, k_p2 = jax.random.split(key, 4)

    def make_params(k, dim, hidden):
        k2, k3, k4, k5 = jax.random.split(k, 4)
        w1 = 0.1 * jax.random.normal(k2, (dim, hidden), dtype=jnp.float32)
        b1 = 0.01 * jax.random.normal(k3, (hidden,), dtype=jnp.float32)
        w2 = 0.1 * jax.random.normal(k4, (hidden, hidden), dtype=jnp.float32)
        b2 = 0.01 * jax.random.normal(k5, (hidden,), dtype=jnp.float32)
        return w1, b1, w2, b2

    # ---- test 1: tiny shape consistent with the module (single block) ----
    B, P, dim, hidden = 2, 8, 10, 32   # features (x, y, cos, sin, w, l, type(4)) -> D = 10
    x = jax.random.normal(k_x1, (B, P, dim), dtype=jnp.float32)
    # Zero out a couple of agents entirely to exercise the invalid-mask path.
    x = x.at[0, 3].set(0.0)
    x = x.at[1, 0].set(0.0)
    w1, b1, w2, b2 = make_params(k_p1, dim, hidden)

    x_result, mask_p, pos = static_fusion_encoder(x, w1, b1, w2, b2)
    jax.block_until_ready((x_result, mask_p, pos))

    assert x_result.shape == (B, P, hidden)
    assert mask_p.shape == (B, P)
    assert pos.shape == (B, P, 7)
    assert bool(mask_p[0, 3]) and bool(mask_p[1, 0])
    assert float(jnp.abs(x_result[0, 3]).sum()) == 0.0
    assert float(jnp.abs(x_result[1, 0]).sum()) == 0.0

    xr_ref, mask_ref, pos_ref = _reference(x, w1, b1, w2, b2)
    np.testing.assert_allclose(np.asarray(x_result), np.asarray(xr_ref), atol=1e-4, rtol=1e-4)
    np.testing.assert_array_equal(np.asarray(mask_p), np.asarray(mask_ref))
    np.testing.assert_allclose(np.asarray(pos), np.asarray(pos_ref), atol=0, rtol=0)

    # ---- test 2: row count not a multiple of the pack factor + grid >= 2 --
    B2, P2 = 3, 33                       # N = 99 -> padded to 128 logical rows
    x2 = jax.random.normal(k_x2, (B2, P2, dim), dtype=jnp.float32)
    x2 = x2.at[0, 1].set(0.0)
    x2 = x2.at[2, 32].set(0.0)
    w1b, b1b, w2b, b2b = make_params(k_p2, dim, hidden)

    x_result2, mask_p2, pos2 = static_fusion_encoder(
        x2, w1b, b1b, w2b, b2b, tm_rows=64)   # small tile -> 2 grid blocks
    jax.block_until_ready((x_result2, mask_p2, pos2))

    xr_ref2, mask_ref2, pos_ref2 = _reference(x2, w1b, b1b, w2b, b2b)
    np.testing.assert_allclose(np.asarray(x_result2), np.asarray(xr_ref2), atol=1e-4, rtol=1e-4)
    np.testing.assert_array_equal(np.asarray(mask_p2), np.asarray(mask_ref2))
    np.testing.assert_allclose(np.asarray(pos2), np.asarray(pos_ref2), atol=0, rtol=0)
    assert float(jnp.abs(x_result2[0, 1]).sum()) == 0.0
    assert float(jnp.abs(x_result2[2, 32]).sum()) == 0.0

    print("KERNEL_OK")
</pallas_src>

<mosaic_0001>
module attributes {stable_mosaic.version = 11 : i64} {
  func.func @encoder_kernel(%arg0: i32, %arg1: memref<8x40xf32, #tpu.memory_space<vmem>>, %arg2: memref<40x128xf32, #tpu.memory_space<vmem>>, %arg3: memref<1x128xf32, #tpu.memory_space<vmem>>, %arg4: memref<128x128xf32, #tpu.memory_space<vmem>>, %arg5: memref<1x128xf32, #tpu.memory_space<vmem>>, %arg6: memref<40x128xf32, #tpu.memory_space<vmem>>, %arg7: memref<8x128xf32, #tpu.memory_space<vmem>>) attributes {dimension_semantics = [#tpu.dimension_semantics<parallel>], iteration_bounds = array<i64: 1>, scalar_prefetch = 0 : i64, scratch_operands = 0 : i64, tpu.core_type = #tpu.core_type<tc>, window_params = [{transform_indices = @transform_0, window_bounds = array<i64: 8, 40>}, {pipeline_mode = #tpu.pipeline_mode<synchronous>, transform_indices = @transform_1, window_bounds = array<i64: 40, 128>}, {pipeline_mode = #tpu.pipeline_mode<synchronous>, transform_indices = @transform_2, window_bounds = array<i64: 1, 128>}, {pipeline_mode = #tpu.pipeline_mode<synchronous>, transform_indices = @transform_3, window_bounds = array<i64: 128, 128>}, {pipeline_mode = #tpu.pipeline_mode<synchronous>, transform_indices = @transform_4, window_bounds = array<i64: 1, 128>}, {pipeline_mode = #tpu.pipeline_mode<synchronous>, transform_indices = @transform_5, window_bounds = array<i64: 40, 128>}, {transform_indices = @transform_6, window_bounds = array<i64: 8, 128>}]} {
    %c0 = arith.constant 0 : index
    %c0_0 = arith.constant 0 : index
    %0 = vector.load %arg1[%c0, %c0_0] : memref<8x40xf32, #tpu.memory_space<vmem>>, vector<8x40xf32>
    %c0_1 = arith.constant 0 : index
    %c0_2 = arith.constant 0 : index
    %1 = vector.load %arg2[%c0_1, %c0_2] : memref<40x128xf32, #tpu.memory_space<vmem>>, vector<40x128xf32>
    %cst = arith.constant dense<0.000000e+00> : vector<8x128xf32>
    %2 = tpu.matmul %0, %1, %cst {dimension_numbers = #tpu.dot_dimension_numbers<[1], [0], [0], [1], [0, 0, 1, 1], [], []>} : vector<8x40xf32>, vector<40x128xf32>, vector<8x128xf32> -> vector<8x128xf32>
    %c0_3 = arith.constant 0 : index
    %c0_4 = arith.constant 0 : index
    %3 = vector.load %arg3[%c0_3, %c0_4] : memref<1x128xf32, #tpu.memory_space<vmem>>, vector<1x128xf32>
    %4 = vector.broadcast %3 : vector<1x128xf32> to vector<8x128xf32>
    %5 = arith.addf %2, %4 : vector<8x128xf32>
    %cst_5 = arith.constant 5.000000e-01 : f32
    %6 = vector.broadcast %cst_5 : f32 to vector<8x128xf32>
    %7 = arith.mulf %6, %5 : vector<8x128xf32>
    %cst_6 = arith.constant 0.707106769 : f32
    %8 = vector.broadcast %cst_6 : f32 to vector<8x128xf32>
    %9 = arith.mulf %5, %8 : vector<8x128xf32>
    %cst_7 = arith.constant 0.000000e+00 : f32
    %10 = vector.broadcast %cst_7 : f32 to vector<8x128xf32>
    %11 = arith.cmpf oge, %9, %10 : vector<8x128xf32>
    %cst_8 = arith.constant 1.000000e+00 : f32
    %cst_9 = arith.constant -1.000000e+00 : f32
    %12 = vector.broadcast %cst_8 : f32 to vector<8x128xf32>
    %13 = vector.broadcast %cst_9 : f32 to vector<8x128xf32>
    %14 = arith.select %11, %12, %13 : vector<8x128xi1>, vector<8x128xf32>
    %15 = math.absf %9 : vector<8x128xf32>
    %cst_10 = arith.constant 0.327591091 : f32
    %16 = vector.broadcast %cst_10 : f32 to vector<8x128xf32>
    %17 = arith.mulf %16, %15 : vector<8x128xf32>
    %cst_11 = arith.constant 1.000000e+00 : f32
    %18 = vector.broadcast %cst_11 : f32 to vector<8x128xf32>
    %19 = arith.addf %18, %17 : vector<8x128xf32>
    %cst_12 = arith.constant 1.000000e+00 : f32
    %20 = vector.broadcast %cst_12 : f32 to vector<8x128xf32>
    %21 = arith.divf %20, %19 : vector<8x128xf32>
    %cst_13 = arith.constant 1.06140542 : f32
    %22 = vector.broadcast %cst_13 : f32 to vector<8x128xf32>
    %23 = arith.mulf %22, %21 : vector<8x128xf32>
    %cst_14 = arith.constant -1.45315206 : f32
    %24 = vector.broadcast %cst_14 : f32 to vector<8x128xf32>
    %25 = arith.addf %23, %24 : vector<8x128xf32>
    %26 = arith.mulf %25, %21 : vector<8x128xf32>
    %cst_15 = arith.constant 1.42141378 : f32
    %27 = vector.broadcast %cst_15 : f32 to vector<8x128xf32>
    %28 = arith.addf %26, %27 : vector<8x128xf32>
    %29 = arith.mulf %28, %21 : vector<8x128xf32>
    %cst_16 = arith.constant -0.284496725 : f32
    %30 = vector.broadcast %cst_16 : f32 to vector<8x128xf32>
    %31 = arith.addf %29, %30 : vector<8x128xf32>
    %32 = arith.mulf %31, %21 : vector<8x128xf32>
    %cst_17 = arith.constant 0.254829586 : f32
    %33 = vector.broadcast %cst_17 : f32 to vector<8x128xf32>
    %34 = arith.addf %32, %33 : vector<8x128xf32>
    %35 = arith.mulf %34, %21 : vector<8x128xf32>
    %cst_18 = arith.constant 0.000000e+00 : f32
    %36 = vector.broadcast %cst_18 : f32 to vector<8x128xf32>
    %37 = arith.subf %36, %15 : vector<8x128xf32>
    %38 = arith.mulf %37, %15 : vector<8x128xf32>
    %39 = math.exp %38 : vector<8x128xf32>
    %40 = arith.mulf %35, %39 : vector<8x128xf32>
    %cst_19 = arith.constant 1.000000e+00 : f32
    %41 = vector.broadcast %cst_19 : f32 to vector<8x128xf32>
    %42 = arith.subf %41, %40 : vector<8x128xf32>
    %43 = arith.mulf %14, %42 : vector<8x128xf32>
    %cst_20 = arith.constant 1.000000e+00 : f32
    %44 = vector.broadcast %cst_20 : f32 to vector<8x128xf32>
    %45 = arith.addf %44, %43 : vector<8x128xf32>
    %46 = arith.mulf %7, %45 : vector<8x128xf32>
    %c0_21 = arith.constant 0 : index
    %c0_22 = arith.constant 0 : index
    %47 = vector.load %arg4[%c0_21, %c0_22] : memref<128x128xf32, #tpu.memory_space<vmem>>, vector<128x128xf32>
    %cst_23 = arith.constant dense<0.000000e+00> : vector<8x128xf32>
    %48 = tpu.matmul %46, %47, %cst_23 {dimension_numbers = #tpu.dot_dimension_numbers<[1], [0], [0], [1], [0, 0, 1, 1], [], []>} : vector<8x128xf32>, vector<128x128xf32>, vector<8x128xf32> -> vector<8x128xf32>
    %c0_24 = arith.constant 0 : index
    %c0_25 = arith.constant 0 : index
    %49 = vector.load %arg5[%c0_24, %c0_25] : memref<1x128xf32, #tpu.memory_space<vmem>>, vector<1x128xf32>
    %50 = vector.broadcast %49 : vector<1x128xf32> to vector<8x128xf32>
    %51 = arith.addf %48, %50 : vector<8x128xf32>
    %cst_26 = arith.constant 0.000000e+00 : f32
    %52 = vector.broadcast %cst_26 : f32 to vector<8x40xf32>
    %53 = arith.cmpf one, %0, %52 : vector<8x40xf32>
    %54 = arith.extui %53 : vector<8x40xi1> to vector<8x40xi32>
    %55 = arith.sitofp %54 : vector<8x40xi32> to vector<8x40xf32>
    %c0_27 = arith.constant 0 : index
    %c0_28 = arith.constant 0 : index
    %56 = vector.load %arg6[%c0_27, %c0_28] : memref<40x128xf32, #tpu.memory_space<vmem>>, vector<40x128xf32>
    %cst_29 = arith.constant dense<0.000000e+00> : vector<8x128xf32>
    %57 = tpu.matmul %55, %56, %cst_29 {dimension_numbers = #tpu.dot_dimension_numbers<[1], [0], [0], [1], [0, 0, 1, 1], [], []>} : vector<8x40xf32>, vector<40x128xf32>, vector<8x128xf32> -> vector<8x128xf32>
    %cst_30 = arith.constant 5.000000e-01 : f32
    %58 = vector.broadcast %cst_30 : f32 to vector<8x128xf32>
    %59 = arith.cmpf olt, %57, %58 : vector<8x128xf32>
    %cst_31 = arith.constant 0.000000e+00 : f32
    %60 = vector.broadcast %cst_31 : f32 to vector<8x128xf32>
    %61 = arith.select %59, %60, %51 : vector<8x128xi1>, vector<8x128xf32>
    %c0_32 = arith.constant 0 : index
    %c0_33 = arith.constant 0 : index
    %62 = vector.load %arg7[%c0_32, %c0_33] : memref<8x128xf32, #tpu.memory_space<vmem>>, vector<8x128xf32>
    tpu.vector_store %arg7[%c0_32, %c0_33], %61 {strides = array<i32>} : memref<8x128xf32, #tpu.memory_space<vmem>>, vector<8x128xf32>,
    return
  }
  func.func @transform_0(%arg0: i32) -> (i32, i32) {
    %c0_i32 = arith.constant 0 : i32
    %c0_i32_0 = arith.constant 0 : i32
    return %arg0, %c0_i32 : i32, i32
  }
  func.func @transform_1(%arg0: i32) -> (i32, i32) {
    %c0_i32 = arith.constant 0 : i32
    %c0_i32_0 = arith.constant 0 : i32
    %c0_i32_1 = arith.constant 0 : i32
    return %c0_i32, %c0_i32_0 : i32, i32
  }
  func.func @transform_2(%arg0: i32) -> (i32, i32) {
    %c0_i32 = arith.constant 0 : i32
    %c0_i32_0 = arith.constant 0 : i32
    %c0_i32_1 = arith.constant 0 : i32
    return %c0_i32, %c0_i32_0 : i32, i32
  }
  func.func @transform_3(%arg0: i32) -> (i32, i32) {
    %c0_i32 = arith.constant 0 : i32
    %c0_i32_0 = arith.constant 0 : i32
    %c0_i32_1 = arith.constant 0 : i32
    return %c0_i32, %c0_i32_0 : i32, i32
  }
  func.func @transform_4(%arg0: i32) -> (i32, i32) {
    %c0_i32 = arith.constant 0 : i32
    %c0_i32_0 = arith.constant 0 : i32
    %c0_i32_1 = arith.constant 0 : i32
    return %c0_i32, %c0_i32_0 : i32, i32
  }
  func.func @transform_5(%arg0: i32) -> (i32, i32) {
    %c0_i32 = arith.constant 0 : i32
    %c0_i32_0 = arith.constant 0 : i32
    %c0_i32_1 = arith.constant 0 : i32
    return %c0_i32, %c0_i32_0 : i32, i32
  }
  func.func @transform_6(%arg0: i32) -> (i32, i32) {
    %c0_i32 = arith.constant 0 : i32
    %c0_i32_0 = arith.constant 0 : i32
    return %arg0, %c0_i32 : i32, i32
  }
}

</mosaic_0001>

<bundles_post_ra>
// kernel: tpu_custom_call.1
= control target key start
LH: loop header
LB: loop body
LE: loop exit
PB: predicated region body
PF: predicated region fallthrough
CT: control target
= control target key end

     0   :  { %11 = vsyncpa [#allocation3], 0  ;;  %s712_s0 = inlined_call_operand.hbm [shape: f32[8,40], index: 0, kind: input, shape index: {}]   ;;  %s713_s1 = inlined_call_operand.hbm [shape: f32[40,128], index: 1, kind: input, shape index: {}]   ;;  %s714_s2 = inlined_call_operand.vmem [shape: f32[1,128], index: 2, kind: input, shape index: {}]   ;;  %s715_s3 = inlined_call_operand.hbm [shape: f32[128,128], index: 3, kind: input, shape index: {}]   ;;  %s716_s4 = inlined_call_operand.vmem [shape: f32[1,128], index: 4, kind: input, shape index: {}]   ;;  %s717_s5 = inlined_call_operand.hbm [shape: f32[40,128], index: 5, kind: input, shape index: {}]   ;;  %s718_s6 = inlined_call_operand.hbm [shape: f32[8,128], index: 6, kind: output, shape index: {}]  }
   0x1   :  { %12 = vsyncpa [#allocation6], 0 }
   0x2   :  { %13 = vsyncpa [#allocation9], 0 }
   0x3   :  { %14 = vsyncpa [#allocation4], 0  ;;  %s602_s21 = smov [#allocation5]  }
   0x4   :  { %s30_s22 = sshll.u32 %s602_s21, 4  ;;  %s31_s22 = int_to_ptr.vmem [resolvable:$true] %s30_s22 }
   0x5   :  { %s502_s23 = scalar_lea.vmem %s31_s22, 640  ;;  %p507_p1 = scmp.lt.s32.totalorder %s31_s22, %s31_s22 }
   0x6   :  { %p503_p0 = scmp.ne.s32.totalorder %s31_s22, %s502_s23  ;;  %p508_p2 = scmp.lt.s32.totalorder %s502_s23, %s502_s23 }
   0x8   :  { %p509_p3 = por %p508_p2, %p507_p1 }
   0xa   :  { %p510_p4 = pnand %p509_p3, %p503_p0 }
   0xc   :  { %513 = shalt.err (!%p510_p4)
}
   0xd   :  { %s603_s24 = smov 128   ;;  %s604_s25 = smov 8  }
   0xe   :  { %36 = dma.hbm_to_vmem [thread:$0]  %s713_s1, 640, %s31_s22, [#allocation6], %s603_s24, %s603_s24, %s604_s25  }
   0xf   :  { %s605_s28 = smov [#allocation2]   ;;  %s606_s30 = smov [#allocation7]  }
  0x10   :  { %s21_s29 = sshll.u32 %s605_s28, 4  ;;  %s44_s7 = sshll.u32 %s606_s30, 4  ;;  %s22_s29 = int_to_ptr.vmem [resolvable:$true] %s21_s29  ;;  %s45_s7 = int_to_ptr.vmem [resolvable:$true] %s44_s7 }
  0x11   :  { %s522_s8 = scalar_lea.vmem %s22_s29, 128  ;;  %p527_p6 = scmp.lt.s32.totalorder %s22_s29, %s22_s29 }
  0x12   :  { %p523_p5 = scmp.ne.s32.totalorder %s22_s29, %s522_s8  ;;  %p528_p7 = scmp.lt.s32.totalorder %s522_s8, %s522_s8 }
  0x14   :  { %p529_p8 = por %p528_p7, %p527_p6 }
  0x16   :  { %p530_p9 = pnand %p529_p8, %p523_p5 }
  0x18   :  { %533 = shalt.err (!%p530_p9)
}
  0x19   :  { %24 = dma.hbm_to_vmem [thread:$0]  %s712_s0, 128, %s22_s29, [#allocation3]  }
  0x1a   :  { %s542_s11 = scalar_lea.vmem %s45_s7, 2048  ;;  %p547_p11 = scmp.lt.s32.totalorder %s45_s7, %s45_s7 }
  0x1b   :  { %p543_p10 = scmp.ne.s32.totalorder %s45_s7, %s542_s11  ;;  %p548_p12 = scmp.lt.s32.totalorder %s542_s11, %s542_s11 }
  0x1d   :  { %p549_p13 = por %p548_p12, %p547_p11 }
  0x1f   :  { %p550_p0 = pnand %p549_p13, %p543_p10 }
  0x21   :  { %553 = shalt.err (!%p550_p0)
}
  0x22   :  { %50 = dma.hbm_to_vmem [thread:$0]  %s715_s3, 2048, %s45_s7, [#allocation6], %s603_s24, %s603_s24, %s604_s25  }
  0x23   :  { %s607_s13 = smov [#allocation8]  }
  0x24   :  { %s58_s14 = sshll.u32 %s607_s13, 4  ;;  %s59_s14 = int_to_ptr.vmem [resolvable:$true] %s58_s14 }
  0x25   :  { %s562_s15 = scalar_lea.vmem %s59_s14, 640  ;;  %p567_p2 = scmp.lt.s32.totalorder %s59_s14, %s59_s14 }
  0x26   :  { %p563_p1 = scmp.ne.s32.totalorder %s59_s14, %s562_s15  ;;  %p568_p3 = scmp.lt.s32.totalorder %s562_s15, %s562_s15 }
  0x28   :  { %p569_p4 = por %p568_p3, %p567_p2 }
  0x2a   :  { %p570_p5 = pnand %p569_p4, %p563_p1 }
  0x2c   :  { %573 = shalt.err (!%p570_p5)
}
  0x2d   :  { %64 = dma.hbm_to_vmem [thread:$0]  %s717_s5, 640, %s59_s14, [#allocation9], %s603_s24, %s603_s24, %s604_s25  }
  0x2e   :  { %594 = dma.done.wait [#allocation3], 128  }
  0x2f   :  { %595 = vsyncadd [#allocation3], 4294967168 }
  0x30   :  { %596 = dma.done.wait [#allocation6], 2688  }
  0x31   :  { %597 = vsyncadd [#allocation6], 4294964608 }
  0x32   :  { %598 = dma.done.wait [#allocation9], 640  }
  0x33   :  { %599 = vsyncadd [#allocation9], 4294966656  ;;  %v608_v0 = vmov 0.0   ;;  %vm609_vm0 = vmmov 0   ;;  %v82_v1 = vld [vmem:[#allocation5 + $0x20] sm:$0xff]  ;;  %v81_v2 = vld [vmem:[#allocation5 + $0x18] sm:$0xff] }
  0x34   :  { %419 = vmatprep.subr.mxu0 %v608_v0  ;;  %429 = vmatprep.mubr.msk.f32.mxu0 %vm609_vm0, %v608_v0  ;;  %v80_v3 = vld [vmem:[#allocation5 + $0x10] sm:$0xff]  ;;  %v79_v4 = vld [vmem:[#allocation5 + $0x8] sm:$0xff]  ;;  %v78_v5 = vld [vmem:[#allocation5] sm:$0xff]  ;;  %vm90_vm1 = vcmask 326656   ;;  %v610_v53 = vmov -1.0   ;;  %s611_s18 = smov [#allocation10]  }
  0x35   :  { %432 = vmatprep.subr.mxu1 %v608_v0  ;;  %464 = vmatprep.mubr.msk.f32.mxu1 %vm609_vm0, %v608_v0  ;;  %v77_v6 = vld [vmem:[#allocation2] sm:$0xff]  ;;  %v206_v7 = vld [vmem:[#allocation7 + $0x78] sm:$0xff]  ;;  %v204_v9 = vld [vmem:[#allocation7 + $0x68] sm:$0xff]  ;;  %s374_s19 = sshll.u32 %s611_s18, 4  ;;  %s375_s19 = int_to_ptr.vmem [resolvable:$true] %s374_s19 }
  0x36   :  { %420 = vmatpush3.msra.mxu0 %v82_v1  ;;  %v205_v8 = vld [vmem:[#allocation7 + $0x70] sm:$0xff]  ;;  %433 = vmatpush3.msra.mxu1 %v206_v7  ;;  %v291_v10 = vld [vmem:[#allocation8 + $0x20] sm:$0xff]  ;;  %v290_v12 = vld [vmem:[#allocation8 + $0x18] sm:$0xff]  ;;  %vm284_vm2 = vcmp.ne.f32.partialorder %v77_v6, 0.0  ;;  %s574_s20 = scalar_lea.vmem %s375_s19, 128  ;;  %p579_p7 = scmp.lt.s32.totalorder %s375_s19, %s375_s19 }
  0x37   :  { %421 = vmatprep.subr.mxu0 %v608_v0  ;;  %434 = vmatprep.subr.mxu1 %v608_v0  ;;  %v203_v11 = vld [vmem:[#allocation7 + $0x60] sm:$0xff]  ;;  %v289_v13 = vld [vmem:[#allocation8 + $0x10] sm:$0xff]  ;;  %v202_v14 = vld [vmem:[#allocation7 + $0x58] sm:$0xff]  ;;  %v388_v18 = vsel %vm284_vm2, 1.0, %v608_v0  ;;  %p575_p6 = scmp.ne.s32.totalorder %s375_s19, %s574_s20  ;;  %p580_p8 = scmp.lt.s32.totalorder %s574_s20, %s574_s20 }
  0x38   :  { %422 = vmatpush3.msra.mxu0 %v81_v2  ;;  %435 = vmatpush3.msra.mxu1 %v205_v8  ;;  %v288_v15 = vld [vmem:[#allocation8 + $0x8] sm:$0xff]  ;;  %v201_v16 = vld [vmem:[#allocation7 + $0x50] sm:$0xff]  ;;  %v287_v17 = vld [vmem:[#allocation8] sm:$0xff] }
  0x39   :  { %423 = vmatprep.subr.mxu0 %v608_v0  ;;  %436 = vmatprep.subr.mxu1 %v608_v0  ;;  %v200_v19 = vld [vmem:[#allocation7 + $0x48] sm:$0xff]  ;;  %v199_v20 = vld [vmem:[#allocation7 + $0x40] sm:$0xff]  ;;  %v198_v21 = vld [vmem:[#allocation7 + $0x38] sm:$0xff]  ;;  %p581_p9 = por %p580_p8, %p579_p7 }
  0x3a   :  { %424 = vmatpush3.msra.mxu0 %v80_v3  ;;  %437 = vmatpush3.msra.mxu1 %v204_v9  ;;  %v197_v22 = vld [vmem:[#allocation7 + $0x30] sm:$0xff]  ;;  %v196_v23 = vld [vmem:[#allocation7 + $0x28] sm:$0xff]  ;;  %v195_v24 = vld [vmem:[#allocation7 + $0x20] sm:$0xff] }
  0x3b   :  { %425 = vmatprep.subr.mxu0 %v608_v0  ;;  %438 = vmatprep.subr.mxu1 %v608_v0  ;;  %v194_v25 = vld [vmem:[#allocation7 + $0x18] sm:$0xff]  ;;  %v193_v26 = vld [vmem:[#allocation7 + $0x10] sm:$0xff]  ;;  %v192_v27 = vld [vmem:[#allocation7 + $0x8] sm:$0xff]  ;;  %p582_p10 = pnand %p581_p9, %p575_p6 }
  0x3c   :  { %426 = vmatpush3.msra.mxu0 %v79_v4  ;;  %439 = vmatpush3.msra.mxu1 %v203_v11  ;;  %v191_v28 = vld [vmem:[#allocation7] sm:$0xff]  ;;  %v385_v29 = vld [vmem:[%s714_s2] ss:$0 sm:$0xff] }
  0x3d   :  { %427 = vmatprep.subr.mxu0 %v608_v0  ;;  %440 = vmatprep.subr.mxu1 %v608_v0  ;;  %v387_v61 = vld [vmem:[%s716_s4] ss:$0 sm:$0xff] }
  0x3e   :  { %428 = vmatpush3.msra.mxu0 %v78_v5  ;;  %441 = vmatpush3.msra.mxu1 %v202_v14 }
  0x3f   :  { %430 = vmatmul.mubr.msk.f32.vlgmr.msra.gmra.mxu0 %vm90_vm1, %v77_v6  ;;  %467 = vmatprep.subr.mxu0 %v608_v0 }
  0x40   :  { %477 = vmatprep.mubr.msk.f32.mxu0 %vm609_vm0, %v608_v0  ;;  %468 = vmatpush3.msra.mxu0 %v291_v10 }
  0x41   :  { %469 = vmatprep.subr.mxu0 %v608_v0  ;;  %442 = vmatprep.subr.mxu1 %v608_v0 }
  0x42   :  { %470 = vmatpush3.msra.mxu0 %v290_v12  ;;  %443 = vmatpush3.msra.mxu1 %v201_v16 }
  0x43   :  { %471 = vmatprep.subr.mxu0 %v608_v0  ;;  %444 = vmatprep.subr.mxu1 %v608_v0 }
  0x44   :  { %472 = vmatpush3.msra.mxu0 %v289_v13  ;;  %445 = vmatpush3.msra.mxu1 %v200_v19 }
  0x45   :  { %473 = vmatprep.subr.mxu0 %v608_v0  ;;  %446 = vmatprep.subr.mxu1 %v608_v0 }
  0x46   :  { %474 = vmatpush3.msra.mxu0 %v288_v15  ;;  %447 = vmatpush3.msra.mxu1 %v199_v20 }
  0x47   :  { %475 = vmatprep.subr.mxu0 %v608_v0  ;;  %448 = vmatprep.subr.mxu1 %v608_v0 }
  0x48   :  { %476 = vmatpush3.msra.mxu0 %v287_v17  ;;  %449 = vmatpush3.msra.mxu1 %v198_v21 }
  0x49   :  { %478 = vmatmul.mubr.msk.f32.vlgmr.msra.gmra.mxu0 %vm90_vm1, %v388_v18  ;;  %450 = vmatprep.subr.mxu1 %v608_v0 }
  0x4a   :  { %451 = vmatpush3.msra.mxu1 %v197_v22 }
  0x4b   :  { %452 = vmatprep.subr.mxu1 %v608_v0 }
  0x4c   :  { %453 = vmatpush3.msra.mxu1 %v196_v23 }
  0x4d   :  { %454 = vmatprep.subr.mxu1 %v608_v0 }
  0x4e   :  { %455 = vmatpush3.msra.mxu1 %v195_v24 }
  0x4f   :  { %456 = vmatprep.subr.mxu1 %v608_v0 }
  0x50   :  { %457 = vmatpush3.msra.mxu1 %v194_v25 }
  0x51   :  { %458 = vmatprep.subr.mxu1 %v608_v0 }
  0x52   :  { %459 = vmatpush3.msra.mxu1 %v193_v26 }
  0x53   :  { %460 = vmatprep.subr.mxu1 %v608_v0 }
  0x54   :  { %461 = vmatpush3.msra.mxu1 %v192_v27 }
  0x55   :  { %462 = vmatprep.subr.mxu1 %v608_v0 }
  0x56   :  { %463 = vmatpush3.msra.mxu1 %v191_v28 }
  0xff   :  { %v160_v30 = vpop.f32.mrf.mxu0 }
 0x100   :  { %v161_v31 = vadd.f32 %v385_v29, %v160_v30 }
 0x101   :  { %v431_v32 = vpop.f32.mrf.mxu0 }
 0x102   :  { %v165_v33 = vmul.f32 0.70710677, %v161_v31  ;;  %v164_v56 = vmul.f32 0.5, %v161_v31 }
 0x104   :  { %v168_v34 = vand.u32 2147483647, %v165_v33  ;;  %vm166_vm3 = vcmp.ge.f32.partialorder %v165_v33, 0.0 }
 0x105   :  { %v167_v54 = vsel %vm166_vm3, 1.0, %v610_v53 }
 0x106   :  { %v169_v35 = vmul.f32 0.3275911, %v168_v34  ;;  %v182_v37 = vsub.f32 0.0, %v168_v34 }
 0x108   :  { %v170_v36 = vadd.f32 1.0, %v169_v35  ;;  %v183_v38 = vmul.f32 %v182_v37, %v168_v34 }
 0x109   :  { %v361_v59 = vpop.f32.mrf.mxu0 }
 0x10a   :  { %490 = vrcp.f32 %v170_v36  ;;  %v184_v40 = vmul.f32 1.442695, %v183_v38  ;;  %vm365_vm4 = vcmp.lt.f32.partialorder %v361_v59, 0.5 }
 0x10b   :  { %v479_v60 = vpop.f32.mrf.mxu0 }
 0x10c   :  { %492 = vpow2.f32 %v184_v40 }
 0x117   :  { %v491_v39 = vpop.eup %490 }
 0x118   :  { %v173_v41 = vmul.f32 1.0614054, %v491_v39 }
 0x119   :  { %v493_v50 = vpop.eup %492 }
 0x11a   :  { %v174_v42 = vadd.f32 -1.4531521, %v173_v41 }
 0x11c   :  { %v175_v43 = vmul.f32 %v491_v39, %v174_v42 }
 0x11e   :  { %v176_v44 = vadd.f32 1.4214138, %v175_v43 }
 0x120   :  { %v177_v45 = vmul.f32 %v491_v39, %v176_v44 }
 0x122   :  { %v178_v46 = vadd.f32 -0.28449672, %v177_v45 }
 0x124   :  { %v179_v47 = vmul.f32 %v491_v39, %v178_v46 }
 0x126   :  { %v180_v48 = vadd.f32 0.2548296, %v179_v47 }
 0x128   :  { %v181_v49 = vmul.f32 %v491_v39, %v180_v48 }
 0x12a   :  { %v186_v51 = vmul.f32 %v493_v50, %v181_v49 }
 0x12c   :  { %v187_v52 = vsub.f32 1.0, %v186_v51 }
 0x12e   :  { %v188_v55 = vmul.f32 %v187_v52, %v167_v54 }
 0x130   :  { %v189_v57 = vadd.f32 1.0, %v188_v55 }
 0x132   :  { %v190_v58 = vmul.f32 %v189_v57, %v164_v56 }
 0x134   :  { %465 = vmatmul.mubr.f32.vlgmr.msra.gmra.mxu1 %v190_v58 }
 0x1f4   :  { %v280_v62 = vpop.f32.mrf.mxu1 }
 0x1f5   :  { %v281_v63 = vadd.f32 %v387_v61, %v280_v62 }
 0x1f6   :  { %v466_v0 = vpop.f32.mrf.mxu1 }
 0x1f7   :  { %v366_v1 = vsel %vm365_vm4, 0.0, %v281_v63 }
 0x1f8   :  { %367 = vst [vmem:[#allocation10] sm:$0xff] %v366_v1 }
 0x1f9   :  { %585 = shalt.err (!%p582_p10)
}
 0x1fa   :  { %377 = dma.vmem_to_hbm [thread:$0]  %s375_s19, 128, %s718_s6, [#allocation4]  }
 0x1fb   :  { %600 = dma.done.wait [#allocation4], 128  }
 0x1fc   :  { %601 = vsyncadd [#allocation4], 4294967168 }
 0x1fd   :  { %381 = vsyncpa [#allocation3], 1 }
 0x1fe   :  { %382 = vsyncpa [#allocation6], 1 }
 0x1ff   :  { %383 = vsyncpa [#allocation9], 1 }
 0x200   :  { %384 = vsyncpa [#allocation4], 1 }

</bundles_post_ra>
